<compile_context>
chip_gen: v6e
topology: v6e:2x2x1
jax: 0.10.0
libtpu: 0.0.40
codegen_flags: <defaults>
</compile_context>

<pallas_src>
import jax
import jax.numpy as jnp
from jax.experimental import pallas as pl
from jax.experimental.pallas import tpu as pltpu


def _round_up(x, m):
    return (x + m - 1) // m * m


# ----------------------------------------------------------------------------
# Pallas kernel
# ----------------------------------------------------------------------------
def _make_neumf_kernel(d_mlp, num_fc):
    """Batch-on-lanes NeuMF forward for one (feat, TILE_B) batch tile.

    Inputs: user_ref, item_ref  -- (d_mlp + d_mf, TILE_B) bf16/f32 slabs,
            ordered [mlp-embedding ; mf-embedding] along the sublane axis.
    Params: (W0u, W0i, b0, [W_k, b_k]*, w_out_mlp, w_out_mf, b_out).
    Output: (1, TILE_B) lane-dense sigmoid ratings.
    """
    def kernel(user_ref, item_ref, *rest):
        out_ref = rest[-1]
        params = rest[:-1]

        # Load once, upcast to f32 (VPU), then slice on 8-aligned sublane
        # boundaries (d_mlp, d_mf are multiples of 8).
        u = user_ref[...].astype(jnp.float32)    # (d_mlp + d_mf, TILE_B)
        it = item_ref[...].astype(jnp.float32)
        u_mlp, u_mf = u[:d_mlp], u[d_mlp:]
        i_mlp, i_mf = it[:d_mlp], it[d_mlp:]

        w0u = params[0][...]                     # (layers[1], d_mlp)
        w0i = params[1][...]                     # (layers[1], d_mlp)
        b0 = params[2][...]                      # (layers[1], 1)

        # Layer 0: split-weight == matmul on concat([u_mlp, i_mlp]) (exact),
        # fused with bias + ReLU.  No concat is ever materialized.
        x = jnp.dot(w0u, u_mlp, preferred_element_type=jnp.float32)
        x = x + jnp.dot(w0i, i_mlp, preferred_element_type=jnp.float32)
        x = jnp.maximum(x + b0, 0.0)

        # Remaining MLP tower (static unroll -- few small layers).
        for k in range(1, num_fc):
            w = params[3 + 2 * (k - 1)][...]     # (out, in)
            b = params[4 + 2 * (k - 1)][...]     # (out, 1)
            x = jnp.maximum(
                jnp.dot(w, x, preferred_element_type=jnp.float32) + b, 0.0)

        w_mlp = params[-3][...]                  # (1, layers[-1])
        w_mf = params[-2][...]                   # (1, d_mf)
        b_out = params[-1][...]                  # (1, 1)

        # GMF product on the VPU, in f32 (v5e has no bf16 VALU).
        mf = u_mf * i_mf
        # Final affine via the exact split-weight trick; lane-dense output.
        logits = (jnp.dot(w_mlp, x, preferred_element_type=jnp.float32)
                  + jnp.dot(w_mf, mf, preferred_element_type=jnp.float32)
                  + b_out)                       # (1, TILE_B)
        out_ref[...] = jax.nn.sigmoid(logits)

    return kernel


# ----------------------------------------------------------------------------
# Wrapper: batch grid + resident-weight BlockSpecs
# ----------------------------------------------------------------------------
def neumf_pallas(user_slab, item_slab, fc_w, fc_b,
                 w_out_mlp, w_out_mf, b_out, *, d_mlp, tile_b):
    d_u, b_pad = user_slab.shape
    assert b_pad % tile_b == 0
    num_tiles = b_pad // tile_b
    num_fc = len(fc_w)

    # Split the first FC weight so concat([u_mlp, i_mlp]) never exists.
    w0u = fc_w[0][:, :d_mlp]
    w0i = fc_w[0][:, d_mlp:]
    weights = [w0u, w0i, fc_b[0]]
    for w, b in zip(fc_w[1:], fc_b[1:]):
        weights += [w, b]
    weights += [w_out_mlp, w_out_mf, b_out]

    def act_spec():
        return pl.BlockSpec((d_u, tile_b), lambda i: (0, i))

    def resident_spec(arr):   # full-shape block, constant index -> DMA'd once
        return pl.BlockSpec(arr.shape, lambda i: (0, 0))

    in_specs = ([act_spec(), act_spec()]
                + [resident_spec(w) for w in weights])

    out = pl.pallas_call(
        _make_neumf_kernel(d_mlp, num_fc),
        out_shape=jax.ShapeDtypeStruct((1, b_pad), jnp.float32),
        grid=(num_tiles,),
        in_specs=in_specs,
        out_specs=pl.BlockSpec((1, tile_b), lambda i: (0, i)),
        compiler_params=pltpu.CompilerParams(
            dimension_semantics=("parallel",),
            # Double-buffered bf16 slabs + f32 intermediates are ~0.7 KB/col
            # (< 6 MiB at tile_b=8192); 48 MiB stays under v7x's 64 MiB VMEM
            # while not capping larger tile sweeps on v5e/v6e.
            vmem_limit_bytes=48 * 1024 * 1024,
        ),
    )(user_slab, item_slab, *weights)

    return out


# ----------------------------------------------------------------------------
# Parameter construction (deterministic)
# ----------------------------------------------------------------------------
def make_params(key, config, table_dtype=jnp.bfloat16):
    num_users = config["num_users"]
    num_items = config["num_items"]
    layers = config["layers"]
    d_mf = config["latent_dim_mf"]
    d_mlp = config["latent_dim_mlp"]
    assert d_mlp % 8 == 0 and d_mf % 8 == 0, "embedding dims must be multiples of 8"

    keys = jax.random.split(key, 16)
    ki = iter(range(16))

    emb_user_mlp = 0.05 * jax.random.normal(keys[next(ki)], (num_users, d_mlp), jnp.float32)
    emb_item_mlp = 0.05 * jax.random.normal(keys[next(ki)], (num_items, d_mlp), jnp.float32)
    emb_user_mf = 0.05 * jax.random.normal(keys[next(ki)], (num_users, d_mf), jnp.float32)
    emb_item_mf = 0.05 * jax.random.normal(keys[next(ki)], (num_items, d_mf), jnp.float32)

    params = {"d_mlp": d_mlp, "d_mf": d_mf}
    # Pre-transposed + pre-concatenated bf16 tables: column gather yields the
    # kernel's (feat, B) layout directly, and HBM reads are halved vs f32.
    params["user_table_t"] = jnp.concatenate(
        [emb_user_mlp.T, emb_user_mf.T], axis=0).astype(table_dtype)   # (d_mlp+d_mf, U)
    params["item_table_t"] = jnp.concatenate(
        [emb_item_mlp.T, emb_item_mf.T], axis=0).astype(table_dtype)   # (d_mlp+d_mf, I)

    # PyTorch nn.Linear convention: weight (out, in); bias stored as (out, 1).
    fc_w, fc_b = [], []
    for in_size, out_size in zip(layers[:-1], layers[1:]):
        scale = 1.0 / jnp.sqrt(in_size)
        fc_w.append(scale * jax.random.normal(keys[next(ki)], (out_size, in_size), jnp.float32))
        fc_b.append(scale * jax.random.normal(keys[next(ki)], (out_size, 1), jnp.float32))
    params["fc_w"], params["fc_b"] = fc_w, fc_b

    aff_in = layers[-1] + d_mf
    scale = 1.0 / jnp.sqrt(aff_in)
    w_aff = scale * jax.random.normal(keys[next(ki)], (1, aff_in), jnp.float32)
    params["w_out_mlp"] = w_aff[:, : layers[-1]]   # split of the concat weight
    params["w_out_mf"] = w_aff[:, layers[-1]:]
    params["b_out"] = scale * jax.random.normal(keys[next(ki)], (1, 1), jnp.float32)
    return params


# ----------------------------------------------------------------------------
# Full forward (gather glue in plain JAX) and pure-JAX reference
# ----------------------------------------------------------------------------
def neumf_forward(params, users, items, *, tile_b=4096):
    batch = users.shape[0]
    d_mlp = params["d_mlp"]

    # Clamp the tile so tiny batches do not inflate padding, keep it a
    # multiple of 128 lanes.
    tile_b = max(128, min(_round_up(tile_b, 128), _round_up(batch, 128)))
    num_tiles = pl.cdiv(batch, tile_b)
    # v7x: 2 TensorCores split the "parallel" batch axis -> keep grid even so
    # neither core gets a longer tail (one extra ~tile_b*48B tile; no-op cost
    # on single-TC v5e/v6e).
    if num_tiles > 1 and num_tiles % 2 == 1:
        num_tiles += 1
    b_pad = num_tiles * tile_b

    # Pad only the int32 index vectors (cheap) instead of the gathered
    # activation slabs -- avoids a full extra HBM read+write of activations.
    if b_pad != batch:
        users = jnp.pad(users, (0, b_pad - batch))
        items = jnp.pad(items, (0, b_pad - batch))

    # Column gathers from pre-transposed tables: (d_mlp + d_mf, b_pad) each,
    # already in the kernel's batch-on-lanes layout (no transpose copy).
    user_slab = jnp.take(params["user_table_t"], users, axis=1)
    item_slab = jnp.take(params["item_table_t"], items, axis=1)

    out = neumf_pallas(user_slab, item_slab,
                       params["fc_w"], params["fc_b"],
                       params["w_out_mlp"], params["w_out_mf"],
                       params["b_out"],
                       d_mlp=d_mlp, tile_b=tile_b)

    # Padded tail columns are garbage-in/garbage-out per-column only; slice
    # them off here (never reduce over the full padded output).
    return out[0, :batch].reshape(batch, 1)


def neumf_reference(params, users, items):
    """Pure-JAX reference mirroring the PyTorch forward exactly (same bf16
    table storage, f32 compute)."""
    d_mlp = params["d_mlp"]
    user_tab = params["user_table_t"].astype(jnp.float32)
    item_tab = params["item_table_t"].astype(jnp.float32)
    u = user_tab[:, users]          # (d_mlp + d_mf, B)
    it = item_tab[:, items]
    u_mlp, u_mf = u[:d_mlp].T, u[d_mlp:].T
    i_mlp, i_mf = it[:d_mlp].T, it[d_mlp:].T

    mlp_vector = jnp.concatenate([u_mlp, i_mlp], axis=1)
    mf_vector = u_mf * i_mf
    x = mlp_vector
    for w, b in zip(params["fc_w"], params["fc_b"]):
        x = jnp.maximum(x @ w.T + b[:, 0], 0.0)
    vector = jnp.concatenate([x, mf_vector], axis=1)
    w_full = jnp.concatenate([params["w_out_mlp"], params["w_out_mf"]], axis=1)
    logits = vector @ w_full.T + params["b_out"][:, 0]
    return jax.nn.sigmoid(logits)


if __name__ == "__main__":
    config = {
        "num_users": 32,
        "num_items": 64,
        "latent_dim_mlp": 16,
        "latent_dim_mf": 8,
        "layers": [32, 64, 32, 16],   # layers[0] == 2 * latent_dim_mlp
    }

    key = jax.random.PRNGKey(0)
    kp, ku, ki = jax.random.split(key, 3)
    params = make_params(kp, config)

    # Case 1: tiny batch (single tile, tile clamped to 128).
    batch = 8
    users = jax.random.randint(ku, (batch,), 0, config["num_users"], dtype=jnp.int32)
    items = jax.random.randint(ki, (batch,), 0, config["num_items"], dtype=jnp.int32)
    rating = jax.block_until_ready(neumf_forward(params, users, items))
    ref = neumf_reference(params, users, items)
    assert rating.shape == (batch, 1)
    assert jnp.allclose(rating, ref, atol=1e-5, rtol=1e-5)

    # Case 2: small explicit tile, ragged tail (300 rows, tile 128 -> 3 tiles,
    # bumped to 4 for even megacore split; indices padded, not activations).
    batch2 = 300
    ku2, ki2 = jax.random.split(ku)
    users2 = jax.random.randint(ku2, (batch2,), 0, config["num_users"], dtype=jnp.int32)
    items2 = jax.random.randint(ki2, (batch2,), 0, config["num_items"], dtype=jnp.int32)
    rating2 = jax.block_until_ready(neumf_forward(params, users2, items2, tile_b=128))
    ref2 = neumf_reference(params, users2, items2)
    assert rating2.shape == (batch2, 1)
    assert jnp.allclose(rating2, ref2, atol=1e-5, rtol=1e-5)

    # Case 3: default large tile (4096) with a multi-tile even grid.
    batch3 = 5000
    ku3, ki3 = jax.random.split(ki)
    users3 = jax.random.randint(ku3, (batch3,), 0, config["num_users"], dtype=jnp.int32)
    items3 = jax.random.randint(ki3, (batch3,), 0, config["num_items"], dtype=jnp.int32)
    rating3 = jax.block_until_ready(neumf_forward(params, users3, items3))
    ref3 = neumf_reference(params, users3, items3)
    assert rating3.shape == (batch3, 1)
    assert jnp.allclose(rating3, ref3, atol=1e-5, rtol=1e-5)

    print("KERNEL_OK")
</pallas_src>

<mosaic_0001>
module attributes {stable_mosaic.version = 11 : i64} {
  func.func @kernel(%arg0: i32, %arg1: memref<24x128xbf16, #tpu.memory_space<vmem>>, %arg2: memref<24x128xbf16, #tpu.memory_space<vmem>>, %arg3: memref<64x16xf32, #tpu.memory_space<vmem>>, %arg4: memref<64x16xf32, #tpu.memory_space<vmem>>, %arg5: memref<64x1xf32, #tpu.memory_space<vmem>>, %arg6: memref<32x64xf32, #tpu.memory_space<vmem>>, %arg7: memref<32x1xf32, #tpu.memory_space<vmem>>, %arg8: memref<16x32xf32, #tpu.memory_space<vmem>>, %arg9: memref<16x1xf32, #tpu.memory_space<vmem>>, %arg10: memref<1x16xf32, #tpu.memory_space<vmem>>, %arg11: memref<1x8xf32, #tpu.memory_space<vmem>>, %arg12: memref<1x1xf32, #tpu.memory_space<vmem>>, %arg13: memref<1x128xf32, #tpu.memory_space<vmem>>) attributes {dimension_semantics = [#tpu.dimension_semantics<parallel>], iteration_bounds = array<i64: 1>, scalar_prefetch = 0 : i64, scratch_operands = 0 : i64, tpu.core_type = #tpu.core_type<tc>, window_params = [{transform_indices = @transform_0, window_bounds = array<i64: 24, 128>}, {transform_indices = @transform_1, window_bounds = array<i64: 24, 128>}, {pipeline_mode = #tpu.pipeline_mode<synchronous>, transform_indices = @transform_2, window_bounds = array<i64: 64, 16>}, {pipeline_mode = #tpu.pipeline_mode<synchronous>, transform_indices = @transform_3, window_bounds = array<i64: 64, 16>}, {pipeline_mode = #tpu.pipeline_mode<synchronous>, transform_indices = @transform_4, window_bounds = array<i64: 64, 1>}, {pipeline_mode = #tpu.pipeline_mode<synchronous>, transform_indices = @transform_5, window_bounds = array<i64: 32, 64>}, {pipeline_mode = #tpu.pipeline_mode<synchronous>, transform_indices = @transform_6, window_bounds = array<i64: 32, 1>}, {pipeline_mode = #tpu.pipeline_mode<synchronous>, transform_indices = @transform_7, window_bounds = array<i64: 16, 32>}, {pipeline_mode = #tpu.pipeline_mode<synchronous>, transform_indices = @transform_8, window_bounds = array<i64: 16, 1>}, {pipeline_mode = #tpu.pipeline_mode<synchronous>, transform_indices = @transform_9, window_bounds = array<i64: 1, 16>}, {pipeline_mode = #tpu.pipeline_mode<synchronous>, transform_indices = @transform_10, window_bounds = array<i64: 1, 8>}, {pipeline_mode = #tpu.pipeline_mode<synchronous>, transform_indices = @transform_11, window_bounds = array<i64: 1, 1>}, {transform_indices = @transform_12, window_bounds = array<i64: 1, 128>}]} {
    %c0 = arith.constant 0 : index
    %c0_0 = arith.constant 0 : index
    %0 = vector.load %arg1[%c0, %c0_0] : memref<24x128xbf16, #tpu.memory_space<vmem>>, vector<24x128xbf16>
    %1 = arith.extf %0 : vector<24x128xbf16> to vector<24x128xf32>
    %c0_1 = arith.constant 0 : index
    %c0_2 = arith.constant 0 : index
    %2 = vector.load %arg2[%c0_1, %c0_2] : memref<24x128xbf16, #tpu.memory_space<vmem>>, vector<24x128xbf16>
    %3 = arith.extf %2 : vector<24x128xbf16> to vector<24x128xf32>
    %4 = vector.extract_strided_slice %1 {offsets = [0, 0], sizes = [16, 128], strides = [1, 1]} : vector<24x128xf32> to vector<16x128xf32>
    %5 = vector.extract_strided_slice %1 {offsets = [16, 0], sizes = [8, 128], strides = [1, 1]} : vector<24x128xf32> to vector<8x128xf32>
    %6 = vector.extract_strided_slice %3 {offsets = [0, 0], sizes = [16, 128], strides = [1, 1]} : vector<24x128xf32> to vector<16x128xf32>
    %7 = vector.extract_strided_slice %3 {offsets = [16, 0], sizes = [8, 128], strides = [1, 1]} : vector<24x128xf32> to vector<8x128xf32>
    %c0_3 = arith.constant 0 : index
    %c0_4 = arith.constant 0 : index
    %8 = vector.load %arg3[%c0_3, %c0_4] : memref<64x16xf32, #tpu.memory_space<vmem>>, vector<64x16xf32>
    %c0_5 = arith.constant 0 : index
    %c0_6 = arith.constant 0 : index
    %9 = vector.load %arg4[%c0_5, %c0_6] : memref<64x16xf32, #tpu.memory_space<vmem>>, vector<64x16xf32>
    %c0_7 = arith.constant 0 : index
    %c0_8 = arith.constant 0 : index
    %10 = vector.load %arg5[%c0_7, %c0_8] : memref<64x1xf32, #tpu.memory_space<vmem>>, vector<64x1xf32>
    %cst = arith.constant dense<0.000000e+00> : vector<64x128xf32>
    %11 = tpu.matmul %8, %4, %cst {dimension_numbers = #tpu.dot_dimension_numbers<[1], [0], [0], [1], [0, 0, 1, 1], [], []>} : vector<64x16xf32>, vector<16x128xf32>, vector<64x128xf32> -> vector<64x128xf32>
    %cst_9 = arith.constant dense<0.000000e+00> : vector<64x128xf32>
    %12 = tpu.matmul %9, %6, %cst_9 {dimension_numbers = #tpu.dot_dimension_numbers<[1], [0], [0], [1], [0, 0, 1, 1], [], []>} : vector<64x16xf32>, vector<16x128xf32>, vector<64x128xf32> -> vector<64x128xf32>
    %13 = arith.addf %11, %12 : vector<64x128xf32>
    %14 = vector.broadcast %10 : vector<64x1xf32> to vector<64x128xf32>
    %15 = arith.addf %13, %14 : vector<64x128xf32>
    %cst_10 = arith.constant 0.000000e+00 : f32
    %16 = vector.broadcast %cst_10 : f32 to vector<64x128xf32>
    %17 = arith.maximumf %15, %16 : vector<64x128xf32>
    %c0_11 = arith.constant 0 : index
    %c0_12 = arith.constant 0 : index
    %18 = vector.load %arg6[%c0_11, %c0_12] : memref<32x64xf32, #tpu.memory_space<vmem>>, vector<32x64xf32>
    %c0_13 = arith.constant 0 : index
    %c0_14 = arith.constant 0 : index
    %19 = vector.load %arg7[%c0_13, %c0_14] : memref<32x1xf32, #tpu.memory_space<vmem>>, vector<32x1xf32>
    %cst_15 = arith.constant dense<0.000000e+00> : vector<32x128xf32>
    %20 = tpu.matmul %18, %17, %cst_15 {dimension_numbers = #tpu.dot_dimension_numbers<[1], [0], [0], [1], [0, 0, 1, 1], [], []>} : vector<32x64xf32>, vector<64x128xf32>, vector<32x128xf32> -> vector<32x128xf32>
    %21 = vector.broadcast %19 : vector<32x1xf32> to vector<32x128xf32>
    %22 = arith.addf %20, %21 : vector<32x128xf32>
    %cst_16 = arith.constant 0.000000e+00 : f32
    %23 = vector.broadcast %cst_16 : f32 to vector<32x128xf32>
    %24 = arith.maximumf %22, %23 : vector<32x128xf32>
    %c0_17 = arith.constant 0 : index
    %c0_18 = arith.constant 0 : index
    %25 = vector.load %arg8[%c0_17, %c0_18] : memref<16x32xf32, #tpu.memory_space<vmem>>, vector<16x32xf32>
    %c0_19 = arith.constant 0 : index
    %c0_20 = arith.constant 0 : index
    %26 = vector.load %arg9[%c0_19, %c0_20] : memref<16x1xf32, #tpu.memory_space<vmem>>, vector<16x1xf32>
    %cst_21 = arith.constant dense<0.000000e+00> : vector<16x128xf32>
    %27 = tpu.matmul %25, %24, %cst_21 {dimension_numbers = #tpu.dot_dimension_numbers<[1], [0], [0], [1], [0, 0, 1, 1], [], []>} : vector<16x32xf32>, vector<32x128xf32>, vector<16x128xf32> -> vector<16x128xf32>
    %28 = vector.broadcast %26 : vector<16x1xf32> to vector<16x128xf32>
    %29 = arith.addf %27, %28 : vector<16x128xf32>
    %cst_22 = arith.constant 0.000000e+00 : f32
    %30 = vector.broadcast %cst_22 : f32 to vector<16x128xf32>
    %31 = arith.maximumf %29, %30 : vector<16x128xf32>
    %c0_23 = arith.constant 0 : index
    %c0_24 = arith.constant 0 : index
    %32 = vector.load %arg10[%c0_23, %c0_24] : memref<1x16xf32, #tpu.memory_space<vmem>>, vector<1x16xf32>
    %c0_25 = arith.constant 0 : index
    %c0_26 = arith.constant 0 : index
    %33 = vector.load %arg11[%c0_25, %c0_26] : memref<1x8xf32, #tpu.memory_space<vmem>>, vector<1x8xf32>
    %c0_27 = arith.constant 0 : index
    %c0_28 = arith.constant 0 : index
    %34 = vector.load %arg12[%c0_27, %c0_28] : memref<1x1xf32, #tpu.memory_space<vmem>>, vector<1x1xf32>
    %35 = arith.mulf %5, %7 : vector<8x128xf32>
    %cst_29 = arith.constant dense<0.000000e+00> : vector<1x128xf32>
    %36 = tpu.matmul %32, %31, %cst_29 {dimension_numbers = #tpu.dot_dimension_numbers<[1], [0], [0], [1], [0, 0, 1, 1], [], []>} : vector<1x16xf32>, vector<16x128xf32>, vector<1x128xf32> -> vector<1x128xf32>
    %cst_30 = arith.constant dense<0.000000e+00> : vector<1x128xf32>
    %37 = tpu.matmul %33, %35, %cst_30 {dimension_numbers = #tpu.dot_dimension_numbers<[1], [0], [0], [1], [0, 0, 1, 1], [], []>} : vector<1x8xf32>, vector<8x128xf32>, vector<1x128xf32> -> vector<1x128xf32>
    %38 = arith.addf %36, %37 : vector<1x128xf32>
    %39 = vector.broadcast %34 : vector<1x1xf32> to vector<1x128xf32>
    %40 = arith.addf %38, %39 : vector<1x128xf32>
    %41 = arith.negf %40 : vector<1x128xf32>
    %42 = math.exp %41 : vector<1x128xf32>
    %cst_31 = arith.constant 1.000000e+00 : f32
    %43 = vector.broadcast %cst_31 : f32 to vector<1x128xf32>
    %44 = arith.addf %43, %42 : vector<1x128xf32>
    %45 = arith.divf %43, %44 : vector<1x128xf32>
    %c0_32 = arith.constant 0 : index
    %c0_33 = arith.constant 0 : index
    %46 = vector.load %arg13[%c0_32, %c0_33] : memref<1x128xf32, #tpu.memory_space<vmem>>, vector<1x128xf32>
    tpu.vector_store %arg13[%c0_32, %c0_33], %45 {strides = array<i32>} : memref<1x128xf32, #tpu.memory_space<vmem>>, vector<1x128xf32>,
    return
  }
  func.func @transform_0(%arg0: i32) -> (i32, i32) {
    %c0_i32 = arith.constant 0 : i32
    %c0_i32_0 = arith.constant 0 : i32
    return %c0_i32, %arg0 : i32, i32
  }
  func.func @transform_1(%arg0: i32) -> (i32, i32) {
    %c0_i32 = arith.constant 0 : i32
    %c0_i32_0 = arith.constant 0 : i32
    return %c0_i32, %arg0 : i32, i32
  }
  func.func @transform_2(%arg0: i32) -> (i32, i32) {
    %c0_i32 = arith.constant 0 : i32
    %c0_i32_0 = arith.constant 0 : i32
    %c0_i32_1 = arith.constant 0 : i32
    return %c0_i32, %c0_i32_0 : i32, i32
  }
  func.func @transform_3(%arg0: i32) -> (i32, i32) {
    %c0_i32 = arith.constant 0 : i32
    %c0_i32_0 = arith.constant 0 : i32
    %c0_i32_1 = arith.constant 0 : i32
    return %c0_i32, %c0_i32_0 : i32, i32
  }
  func.func @transform_4(%arg0: i32) -> (i32, i32) {
    %c0_i32 = arith.constant 0 : i32
    %c0_i32_0 = arith.constant 0 : i32
    %c0_i32_1 = arith.constant 0 : i32
    return %c0_i32, %c0_i32_0 : i32, i32
  }
  func.func @transform_5(%arg0: i32) -> (i32, i32) {
    %c0_i32 = arith.constant 0 : i32
    %c0_i32_0 = arith.constant 0 : i32
    %c0_i32_1 = arith.constant 0 : i32
    return %c0_i32, %c0_i32_0 : i32, i32
  }
  func.func @transform_6(%arg0: i32) -> (i32, i32) {
    %c0_i32 = arith.constant 0 : i32
    %c0_i32_0 = arith.constant 0 : i32
    %c0_i32_1 = arith.constant 0 : i32
    return %c0_i32, %c0_i32_0 : i32, i32
  }
  func.func @transform_7(%arg0: i32) -> (i32, i32) {
    %c0_i32 = arith.constant 0 : i32
    %c0_i32_0 = arith.constant 0 : i32
    %c0_i32_1 = arith.constant 0 : i32
    return %c0_i32, %c0_i32_0 : i32, i32
  }
  func.func @transform_8(%arg0: i32) -> (i32, i32) {
    %c0_i32 = arith.constant 0 : i32
    %c0_i32_0 = arith.constant 0 : i32
    %c0_i32_1 = arith.constant 0 : i32
    return %c0_i32, %c0_i32_0 : i32, i32
  }
  func.func @transform_9(%arg0: i32) -> (i32, i32) {
    %c0_i32 = arith.constant 0 : i32
    %c0_i32_0 = arith.constant 0 : i32
    %c0_i32_1 = arith.constant 0 : i32
    return %c0_i32, %c0_i32_0 : i32, i32
  }
  func.func @transform_10(%arg0: i32) -> (i32, i32) {
    %c0_i32 = arith.constant 0 : i32
    %c0_i32_0 = arith.constant 0 : i32
    %c0_i32_1 = arith.constant 0 : i32
    return %c0_i32, %c0_i32_0 : i32, i32
  }
  func.func @transform_11(%arg0: i32) -> (i32, i32) {
    %c0_i32 = arith.constant 0 : i32
    %c0_i32_0 = arith.constant 0 : i32
    %c0_i32_1 = arith.constant 0 : i32
    return %c0_i32, %c0_i32_0 : i32, i32
  }
  func.func @transform_12(%arg0: i32) -> (i32, i32) {
    %c0_i32 = arith.constant 0 : i32
    %c0_i32_0 = arith.constant 0 : i32
    return %c0_i32, %arg0 : i32, i32
  }
}

</mosaic_0001>

<bundles_post_ra>
// kernel: tpu_custom_call.1
= control target key start
LH: loop header
LB: loop body
LE: loop exit
PB: predicated region body
PF: predicated region fallthrough
CT: control target
= control target key end

     0   :  { %s1214_s0 = inlined_call_operand.vmem [shape: bf16[24,128], index: 0, kind: input, shape index: {}]   ;;  %s1215_s1 = inlined_call_operand.vmem [shape: bf16[24,128], index: 1, kind: input, shape index: {}]   ;;  %s1216_s2 = inlined_call_operand.vmem [shape: f32[64,16], index: 2, kind: input, shape index: {}]   ;;  %s1217_s3 = inlined_call_operand.vmem [shape: f32[64,16], index: 3, kind: input, shape index: {}]   ;;  %s1218_s4 = inlined_call_operand.vmem [shape: f32[64,1], index: 4, kind: input, shape index: {}]   ;;  %s1219_s5 = inlined_call_operand.vmem [shape: f32[32,64], index: 5, kind: input, shape index: {}]   ;;  %s1220_s6 = inlined_call_operand.vmem [shape: f32[32,1], index: 6, kind: input, shape index: {}]   ;;  %s1221_s7 = inlined_call_operand.vmem [shape: f32[16,32], index: 7, kind: input, shape index: {}]   ;;  %s1222_s8 = inlined_call_operand.vmem [shape: f32[16,1], index: 8, kind: input, shape index: {}]   ;;  %s1223_s9 = inlined_call_operand.vmem [shape: f32[1,16], index: 9, kind: input, shape index: {}]   ;;  %s1224_s10 = inlined_call_operand.vmem [shape: f32[1,8], index: 10, kind: input, shape index: {}]   ;;  %s1225_s11 = inlined_call_operand.<no memory space> [shape: f32[1,1], index: 11, kind: input, shape index: {}]   ;;  %s1226_s12 = inlined_call_operand.hbm [shape: f32[1,128], index: 12, kind: output, shape index: {}]  }
   0x1   :  { %v17_v0 = vstv %s1225_s11 }
   0x2   :  { %18 = vst [vmem:[#allocation2] sm:$0x1] %v17_v0 }
   0x3   :  { %v835_v1 = vld [vmem:[%s1215_s1] sm:$0xff]   ;;  %vm80_vm0 = vcmask 130048   ;;  %v990_v9 = vmov 0   ;;  %v65_v10 = vld [vmem:[%s1217_s3 + $0x8] sm:$0xff]  ;;  %v66_v12 = vld [vmem:[%s1217_s3 + $0x10] sm:$0xff] }
   0x4   :  { %v831_v2 = vld [vmem:[%s1214_s0] sm:$0xff]   ;;  %v836_v4 = vunpack.c.l.bf16 %v835_v1  ;;  %v837_v5 = vunpack.c.h.bf16 %v835_v1  ;;  %962 = vset.pattern.permute.xlu0 %v990_v9  ;;  %963 = vset.pattern.permute.xlu1 %v990_v9  ;;  %v57_v11 = vld [vmem:[%s1216_s2 + $0x8] sm:$0xff]  ;;  %v58_v13 = vld [vmem:[%s1216_s2 + $0x10] sm:$0xff] }
   0x5   :  { %v64_v3 = vld [vmem:[%s1217_s3] sm:$0xff]  ;;  %v832_v6 = vunpack.c.l.bf16 %v831_v2  ;;  %v833_v7 = vunpack.c.h.bf16 %v831_v2  ;;  %v79_v14 = vld [vmem:[%s1218_s4 + $0x38] sm:$0xff]  ;;  %v77_v15 = vld [vmem:[%s1218_s4 + $0x28] sm:$0xff] }
   0x6   :  { %885 = vmatprep.mubr.msk.f32.mxu0 %vm80_vm0, %v64_v3  ;;  %v56_v8 = vld [vmem:[%s1216_s2] sm:$0xff]  ;;  %881 = vmatprep.subr.mxu0 %v837_v5  ;;  %v67_v16 = vld [vmem:[%s1217_s3 + $0x18] sm:$0xff]  ;;  %v78_v20 = vld [vmem:[%s1218_s4 + $0x30] sm:$0xff] }
   0x7   :  { %901 = vmatprep.mubr.msk.f32.mxu1 %vm80_vm0, %v56_v8  ;;  %897 = vmatprep.subr.mxu1 %v833_v7  ;;  %v59_v17 = vld [vmem:[%s1216_s2 + $0x18] sm:$0xff]  ;;  %v68_v18 = vld [vmem:[%s1217_s3 + $0x20] sm:$0xff] }
   0x8   :  { %882 = vmatpush3.msra.mxu0 %v837_v5  ;;  %898 = vmatpush3.msra.mxu1 %v833_v7  ;;  %v60_v19 = vld [vmem:[%s1216_s2 + $0x20] sm:$0xff] }
   0x9   :  { %883 = vmatprep.subr.mxu0 %v836_v4  ;;  %899 = vmatprep.subr.mxu1 %v832_v6  ;;  %v76_v21 = vld [vmem:[%s1218_s4 + $0x20] sm:$0xff] }
   0xa   :  { %884 = vmatpush3.msra.mxu0 %v836_v4  ;;  %900 = vmatpush3.msra.mxu1 %v832_v6 }
   0xb   :  { %886 = vmatmul.mubr.msk.f32.vlgmr.msra.gmra.mxu0 %vm80_vm0, %v65_v10  ;;  %902 = vmatmul.mubr.msk.f32.vlgmr.msra.gmra.mxu1 %vm80_vm0, %v57_v11 }
   0xc   :  { %888 = vmatprep.mubr.msk.f32.mxu0 %vm80_vm0, %v66_v12  ;;  %904 = vmatprep.mubr.msk.f32.mxu1 %vm80_vm0, %v58_v13 }
   0xd   :  { %376 = vperm.xlu0 %962, %v79_v14   ;;  %366 = vperm.xlu1 %963, %v77_v15  }
   0xf   :  { %889 = vmatmul.mubr.msk.f32.gmra.mxu0 %vm80_vm0, %v67_v16  ;;  %905 = vmatmul.mubr.msk.f32.gmra.mxu1 %vm80_vm0, %v59_v17 }
  0x10   :  { %19 = vsyncpa [#allocation4], 0  ;;  %891 = vmatprep.mubr.msk.f32.mxu0 %vm80_vm0, %v68_v18  ;;  %907 = vmatprep.mubr.msk.f32.mxu1 %vm80_vm0, %v60_v19  ;;  %v69_v22 = vld [vmem:[%s1217_s3 + $0x28] sm:$0xff]  ;;  %v70_v24 = vld [vmem:[%s1217_s3 + $0x30] sm:$0xff]  ;;  %vm423_vm1 = vcmask 523264   ;;  %vm539_vm2 = vcmask 261120  }
  0x11   :  { %v61_v23 = vld [vmem:[%s1216_s2 + $0x28] sm:$0xff]  ;;  %v62_v25 = vld [vmem:[%s1216_s2 + $0x30] sm:$0xff]  ;;  %371 = vperm.xlu0 %962, %v78_v20   ;;  %361 = vperm.xlu1 %963, %v76_v21   ;;  %v75_v26 = vld [vmem:[%s1218_s4 + $0x18] sm:$0xff]  ;;  %vm992_vm3 = vmmov 0   ;;  %vm627_vm4 = vcmask 64512  }
  0x12   :  { %v74_v27 = vld [vmem:[%s1218_s4 + $0x10] sm:$0xff]  ;;  %v71_v28 = vld [vmem:[%s1217_s3 + $0x38] sm:$0xff]  ;;  %v73_v30 = vld [vmem:[%s1218_s4 + $0x8] sm:$0xff] }
  0x13   :  { %892 = vmatmul.mubr.msk.f32.gmra.mxu0 %vm80_vm0, %v69_v22  ;;  %908 = vmatmul.mubr.msk.f32.gmra.mxu1 %vm80_vm0, %v61_v23  ;;  %v63_v29 = vld [vmem:[%s1216_s2 + $0x38] sm:$0xff]  ;;  %v72_v31 = vld [vmem:[%s1218_s4] sm:$0xff]  ;;  %v401_v33 = vld [vmem:[%s1220_s6 + $0x10] sm:$0xff] }
  0x14   :  { %894 = vmatprep.mubr.msk.f32.mxu0 %vm80_vm0, %v70_v24  ;;  %910 = vmatprep.mubr.msk.f32.mxu1 %vm80_vm0, %v62_v25  ;;  %v402_v32 = vld [vmem:[%s1220_s6 + $0x18] sm:$0xff]  ;;  %v400_v34 = vld [vmem:[%s1220_s6 + $0x8] sm:$0xff]  ;;  %v399_v35 = vld [vmem:[%s1220_s6] sm:$0xff] }
  0x15   :  { %356 = vperm.xlu0 %962, %v75_v26   ;;  %351 = vperm.xlu1 %963, %v74_v27   ;;  %v528_v36 = vld [vmem:[%s1222_s8 + $0x8] sm:$0xff]  ;;  %v527_v37 = vld [vmem:[%s1222_s8] sm:$0xff]  ;;  %v397_v25 = vld [vmem:[%s1219_s5 + $0x10] sm:$0xff] }
  0x16   :  { %v625_v38 = vld [vmem:[#allocation2] sm:$0x1]  ;;  %v396_v24 = vld [vmem:[%s1219_s5 + $0x8] sm:$0xff]  ;;  %v398_v26 = vld [vmem:[%s1219_s5 + $0x18] sm:$0xff] }
  0x17   :  { %895 = vmatmul.mubr.msk.f32.gmra.mxu0 %vm80_vm0, %v71_v28  ;;  %911 = vmatmul.mubr.msk.f32.gmra.mxu1 %vm80_vm0, %v63_v29  ;;  %v395_v39 = vld [vmem:[%s1219_s5] sm:$0xff] }
  0x18   :  { %929 = vmatprep.mubr.msk.f32.mxu0 %vm423_vm1, %v395_v39  ;;  %v525_v27 = vld [vmem:[%s1221_s7] sm:$0xff] }
  0x19   :  { %346 = vperm.xlu0 %962, %v73_v30   ;;  %341 = vperm.xlu1 %963, %v72_v31  }
  0x1a   :  { %943 = vmatprep.mubr.msk.f32.mxu1 %vm539_vm2, %v525_v27 }
  0x1d   :  { %420 = vperm.xlu0 %962, %v402_v32   ;;  %415 = vperm.xlu1 %963, %v401_v33  }
  0x21   :  { %410 = vperm.xlu0 %962, %v400_v34   ;;  %405 = vperm.xlu1 %963, %v399_v35  }
  0x25   :  { %536 = vperm.xlu0 %962, %v528_v36   ;;  %531 = vperm.xlu1 %963, %v527_v37  }
  0x29   :  { %776 = vperm.xlu0 %962, %v625_v38  }
  0x88   :  { %v377_v46 = vpop.permute.xlu0 %376  ;;  %v367_v47 = vpop.permute.xlu1 %366 }
  0x8c   :  { %v372_v54 = vpop.permute.xlu0 %371  ;;  %v362_v55 = vpop.permute.xlu1 %361 }
  0x90   :  { %v357_v5 = vpop.permute.xlu0 %356  ;;  %v352_v6 = vpop.permute.xlu1 %351 }
  0x94   :  { %v347_v16 = vpop.permute.xlu0 %346  ;;  %v342_v17 = vpop.permute.xlu1 %341 }
  0x98   :  { %v421_v28 = vpop.permute.xlu0 %420  ;;  %v416_v30 = vpop.permute.xlu1 %415 }
  0x9c   :  { %v411_v34 = vpop.permute.xlu0 %410  ;;  %v406_v39 = vpop.permute.xlu1 %405 }
  0xcb   :  { %v887_v40 = vpop.f32.mrf.mxu0  ;;  %v903_v41 = vpop.f32.mrf.mxu1 }
  0xcc   :  { %v306_v10 = vadd.f32 %v903_v41, %v887_v40 }
  0xcd   :  { %v171_v42 = vpop.f32.mrf.mxu0  ;;  %v300_v43 = vpop.f32.mrf.mxu1 }
  0xce   :  { %v301_v13 = vadd.f32 %v300_v43, %v171_v42  ;;  %v380_v18 = vadd.f32 %v347_v16, %v306_v10 }
  0xcf   :  { %v890_v44 = vpop.f32.mrf.mxu0  ;;  %v906_v45 = vpop.f32.mrf.mxu1 }
  0xd0   :  { %v316_v1 = vadd.f32 %v906_v45, %v890_v44  ;;  %v379_v20 = vadd.f32 %v342_v17, %v301_v13  ;;  %v388_v22 = vmax.f32 %v380_v18, 0.0  ;;  %v526_v44 = vld [vmem:[%s1221_s7 + $0x8] sm:$0xff] }
  0xd1   :  { %v181_v48 = vpop.f32.mrf.mxu0  ;;  %v310_v49 = vpop.f32.mrf.mxu1  ;;  %v46_v45 = vld [vmem:[%s1214_s0 + $0x8] sm:$0xf] }
  0xd2   :  { %v311_v7 = vadd.f32 %v310_v49, %v181_v48  ;;  %v382_v11 = vadd.f32 %v357_v5, %v316_v1  ;;  %v387_v23 = vmax.f32 %v379_v20, 0.0 }
  0xd3   :  { %v893_v50 = vpop.f32.mrf.mxu0  ;;  %v909_v51 = vpop.f32.mrf.mxu1 }
  0xd4   :  { %v326_v58 = vadd.f32 %v909_v51, %v893_v50  ;;  %v381_v14 = vadd.f32 %v352_v6, %v311_v7  ;;  %v390_v19 = vmax.f32 %v382_v11, 0.0  ;;  %v991_v50 = vmov 0.0   ;;  %v624_v51 = vld [vmem:[%s1224_s10] sm:$0x1] }
  0xd5   :  { %v191_v52 = vpop.f32.mrf.mxu0  ;;  %v320_v53 = vpop.f32.mrf.mxu1 }
  0xd6   :  { %v321_v62 = vadd.f32 %v320_v53, %v191_v52  ;;  %v384_v2 = vadd.f32 %v367_v47, %v326_v58  ;;  %v389_v21 = vmax.f32 %v381_v14, 0.0  ;;  %v49_v47 = vunpack.c.l.bf16 %v46_v45  ;;  %v537_v52 = vpop.permute.xlu0 %536 }
  0xd7   :  { %v896_v56 = vpop.f32.mrf.mxu0  ;;  %v912_v57 = vpop.f32.mrf.mxu1 }
  0xd8   :  { %v336_v59 = vadd.f32 %v912_v57, %v896_v56  ;;  %v383_v8 = vadd.f32 %v362_v55, %v321_v62  ;;  %v392_v12 = vmax.f32 %v384_v2, 0.0  ;;  %v532_v55 = vpop.permute.xlu1 %531 }
  0xd9   :  { %v201_v60 = vpop.f32.mrf.mxu0  ;;  %v330_v61 = vpop.f32.mrf.mxu1 }
  0xda   :  { %v386_v63 = vadd.f32 %v377_v46, %v336_v59  ;;  %v331_v0 = vadd.f32 %v330_v61, %v201_v60  ;;  %v391_v15 = vmax.f32 %v383_v8, 0.0  ;;  %v52_v46 = vld [vmem:[%s1215_s1 + $0x8] sm:$0xf]  ;;  %v623_v60 = vld [vmem:[%s1223_s9] sm:$0x1]  ;;  %v777_v2 = vpop.permute.xlu0 %776  ;;  %s993_s9 = smov [#allocation3]  }
  0xdb   :  { %v55_v48 = vunpack.c.l.bf16 %v52_v46  ;;  %s797_s10 = sshll.u32 %s993_s9, 4  ;;  %s798_s10 = int_to_ptr.vmem [resolvable:$true] %s797_s10 }
  0xdc   :  { %v394_v3 = vmax.f32 %v386_v63, 0.0  ;;  %v385_v4 = vadd.f32 %v372_v54, %v331_v0  ;;  %v779_v63 = vlaneseq  ;;  %s968_s20 = scalar_lea.vmem %s798_s10, 16  ;;  %s972_s21 = scalar_lea.vmem %s798_s10, 32 }
  0xdd   :  { %v626_v49 = vmul.f32 %v55_v48, %v49_v47  ;;  %p969_p0 = scmp.ne.s32.totalorder %s798_s10, %s968_s20  ;;  %p973_p1 = scmp.lt.s32.totalorder %s798_s10, %s798_s10 }
  0xde   :  { %v393_v9 = vmax.f32 %v385_v4, 0.0  ;;  %913 = vmatprep.subr.mxu0 %v394_v3  ;;  %v780_v0 = vshrl.u32 %v779_v63, 7  ;;  %p974_p2 = scmp.lt.s32.totalorder %s972_s21, %s968_s20 }
  0xdf   :  { %914 = vmatpush3.msra.mxu0 %v394_v3 }
  0xe0   :  { %915 = vmatprep.subr.mxu0 %v393_v9  ;;  %v781_v1 = vsub.s32 0, %v780_v0  ;;  %p975_p3 = por %p974_p2, %p973_p1 }
  0xe1   :  { %916 = vmatpush3.msra.mxu0 %v393_v9 }
  0xe2   :  { %917 = vmatprep.subr.mxu0 %v392_v12  ;;  %v782_v4 = vrot.slane %v777_v2, %v781_v1  ;;  %p976_p4 = pnand %p975_p3, %p969_p0 }
  0xe3   :  { %918 = vmatpush3.msra.mxu0 %v392_v12 }
  0xe4   :  { %919 = vmatprep.subr.mxu0 %v391_v15 }
  0xe5   :  { %920 = vmatpush3.msra.mxu0 %v391_v15 }
  0xe6   :  { %921 = vmatprep.subr.mxu0 %v390_v19 }
  0xe7   :  { %922 = vmatpush3.msra.mxu0 %v390_v19 }
  0xe8   :  { %923 = vmatprep.subr.mxu0 %v389_v21 }
  0xe9   :  { %924 = vmatpush3.msra.mxu0 %v389_v21 }
  0xea   :  { %925 = vmatprep.subr.mxu0 %v388_v22 }
  0xeb   :  { %926 = vmatpush3.msra.mxu0 %v388_v22 }
  0xec   :  { %927 = vmatprep.subr.mxu0 %v387_v23 }
  0xed   :  { %928 = vmatpush3.msra.mxu0 %v387_v23 }
  0xee   :  { %930 = vmatmul.mubr.msk.f32.vlgmr.msra.gmra.mxu0 %vm423_vm1, %v396_v24  ;;  %951 = vmatprep.subr.mxu0 %v991_v50 }
  0xef   :  { %932 = vmatprep.mubr.msk.f32.mxu0 %vm423_vm1, %v397_v25 }
  0xf2   :  { %933 = vmatmul.mubr.msk.f32.gmra.mxu0 %vm423_vm1, %v398_v26 }
  0xf3   :  { %955 = vmatprep.mubr.msk.f32.mxu0 %vm992_vm3, %v991_v50 }
 0x1ae   :  { %v931_v29 = vpop.f32.mrf.mxu0 }
 0x1af   :  { %v508_v36 = vadd.f32 %v931_v29, %v411_v34 }
 0x1b0   :  { %v502_v31 = vpop.f32.mrf.mxu0 }
 0x1b1   :  { %v503_v40 = vadd.f32 %v502_v31, %v406_v39  ;;  %v522_v42 = vmax.f32 %v508_v36, 0.0 }
 0x1b2   :  { %v934_v32 = vpop.f32.mrf.mxu0 }
 0x1b3   :  { %v518_v33 = vadd.f32 %v934_v32, %v421_v28  ;;  %v521_v43 = vmax.f32 %v503_v40, 0.0 }
 0x1b4   :  { %v512_v35 = vpop.f32.mrf.mxu0 }
 0x1b5   :  { %v524_v37 = vmax.f32 %v518_v33, 0.0  ;;  %v513_v38 = vadd.f32 %v512_v35, %v416_v30 }
 0x1b7   :  { %v523_v41 = vmax.f32 %v513_v38, 0.0  ;;  %935 = vmatprep.subr.mxu1 %v524_v37 }
 0x1b8   :  { %936 = vmatpush3.msra.mxu1 %v524_v37 }
 0x1b9   :  { %937 = vmatprep.subr.mxu1 %v523_v41 }
 0x1ba   :  { %938 = vmatpush3.msra.mxu1 %v523_v41 }
 0x1bb   :  { %939 = vmatprep.subr.mxu1 %v522_v42 }
 0x1bc   :  { %940 = vmatpush3.msra.mxu1 %v522_v42 }
 0x1bd   :  { %941 = vmatprep.subr.mxu1 %v521_v43 }
 0x1be   :  { %942 = vmatpush3.msra.mxu1 %v521_v43 }
 0x1bf   :  { %944 = vmatmul.mubr.msk.f32.vlgmr.msra.gmra.mxu1 %vm539_vm2, %v526_v44  ;;  %946 = vmatprep.subr.mxu1 %v991_v50 }
 0x1c0   :  { %947 = vmatpush3.msra.mxu1 %v626_v49  ;;  %948 = vmatprep.mubr.msk.f32.mxu1 %vm992_vm3, %v991_v50 }
 0x1c3   :  { %949 = vmatmul.mubr.msk.f32.vlgmr.msra.gmra.mxu1 %vm627_vm4, %v624_v51 }
 0x27f   :  { %v945_v53 = vpop.f32.mrf.mxu1 }
 0x280   :  { %v618_v54 = vadd.f32 %v945_v53, %v537_v52 }
 0x281   :  { %v612_v56 = vpop.f32.mrf.mxu1 }
 0x282   :  { %v622_v57 = vmax.f32 %v618_v54, 0.0  ;;  %v613_v58 = vadd.f32 %v612_v56, %v532_v55 }
 0x283   :  { %v697_v61 = vpop.f32.mrf.mxu1 }
 0x284   :  { %v621_v59 = vmax.f32 %v613_v58, 0.0  ;;  %952 = vmatpush3.msra.mxu0 %v622_v57 }
 0x285   :  { %953 = vmatprep.subr.mxu0 %v991_v50  ;;  %v950_v62 = vpop.f32.mrf.mxu1 }
 0x286   :  { %954 = vmatpush3.msra.mxu0 %v621_v59 }
 0x287   :  { %956 = vmatmul.mubr.msk.f32.vlgmr.msra.gmra.mxu0 %vm80_vm0, %v623_v60 }
 0x347   :  { %v770_v3 = vpop.f32.mrf.mxu0 }
 0x348   :  { %v771_v5 = vadd.f32 %v770_v3, %v697_v61 }
 0x349   :  { %v957_v6 = vpop.f32.mrf.mxu0 }
 0x34a   :  { %v783_v7 = vadd.f32 %v782_v4, %v771_v5 }
 0x34c   :  { %v829_v8 = vmul.f32 -1.442695, %v783_v7 }
 0x34e   :  { %964 = vpow2.f32 %v829_v8 }
 0x35b   :  { %v965_v9 = vpop.eup %964 }
 0x35c   :  { %v787_v10 = vadd.f32 1.0, %v965_v9 }
 0x35e   :  { %966 = vrcp.f32 %v787_v10 }
 0x36b   :  { %v967_v11 = vpop.eup %966 }
 0x36c   :  { %790 = vst [vmem:[#allocation3] sm:$0x1] %v967_v11 }
 0x36d   :  { %979 = shalt.err (!%p976_p4)
}
 0x36e   :  { %800 = dma.vmem_to_hbm [thread:$0]  %s798_s10, 16, %s1226_s12, [#allocation4]  }
 0x36f   :  { %988 = dma.done.wait [#allocation4], 16  }
 0x370   :  { %989 = vsyncadd [#allocation4], 4294967280 }
 0x371   :  { %804 = vsyncpa [#allocation4], 1 }

</bundles_post_ra>
